<compile_context>
chip_gen: v7x
topology: tpu7x:2x2x1
jax: 0.10.0
libtpu: 0.0.40
codegen_flags: <defaults>
</compile_context>

<pallas_src>
import jax
import jax.numpy as jnp
from jax import lax
from jax.experimental import pallas as pl
from jax.experimental.pallas import tpu as pltpu


def _round_up(n, m):
    return ((n + m - 1) // m) * m


def _mlp_kernel(x_ref, w1_ref, b1_ref, w2_ref, b2_ref, o_ref):
    # fc1: h[H, TB] = W1[H, S] @ x[TB, S]^T  (contract S; batch stays on lanes).
    h = lax.dot_general(
        w1_ref[...], x_ref[...],
        dimension_numbers=(((1,), (1,)), ((), ())),
        preferred_element_type=jnp.float32)
    h = jnp.maximum(h + b1_ref[...], 0.0)          # b1 is [H, 1] -> lane broadcast
    # fc2: out[A, TB] = W2[A, H] @ h[H, TB]
    out = jnp.dot(w2_ref[...], h, preferred_element_type=jnp.float32)
    o_ref[...] = (out + b2_ref[...]).astype(o_ref.dtype)


def mlp_forward(x, w1, b1, w2, b2, *, block_b=256):
    """Forward pass of the 2-layer MLP.

    x : [B, S] float32
    w1: [H, S], b1: [H]   (PyTorch nn.Linear layout: [out_features, in_features])
    w2: [A, H], b2: [A]
    returns [B, A] float32  == relu(x @ W1.T + b1) @ W2.T + b2
    """
    B, S = x.shape
    H = w1.shape[0]
    A = w2.shape[0]

    x = x.astype(jnp.float32)
    w1 = w1.astype(jnp.float32)
    w2 = w2.astype(jnp.float32)
    b1 = b1.reshape(H, 1).astype(jnp.float32)
    b2 = b2.reshape(A, 1).astype(jnp.float32)

    LANE = 128
    if B <= LANE:
        TB = B                                   # single full-extent block, grid of 1
    else:
        # Lane-dense tiles (multiple of 128).  Cap at block_b so h=(H,TB) stays
        # vreg-resident and at ceil(B/2) so the grid has >=2 steps (v7x megacore).
        TB = min(_round_up(block_b, LANE), _round_up(-(-B // 2), LANE))
    grid = (pl.cdiv(B, TB),)

    flops = 2 * B * S * H + 2 * B * H * A
    bytes_accessed = 4 * (x.size + w1.size + b1.size + w2.size + b2.size + A * B)

    # VMEM: double-buffered x/out tiles + (conservatively) double-buffered weights.
    vmem_bytes = 4 * (2 * TB * S + 2 * A * TB
                      + 2 * (w1.size + b1.size + w2.size + b2.size))
    vmem_limit = max(int(vmem_bytes) + (2 << 20), 8 << 20)

    out_t = pl.pallas_call(
        _mlp_kernel,
        out_shape=jax.ShapeDtypeStruct((A, B), jnp.float32),
        grid=grid,
        in_specs=[
            pl.BlockSpec((TB, S), lambda i: (i, 0)),   # x tile: pipelined over batch
            pl.BlockSpec((H, S), lambda i: (0, 0)),    # W1: VMEM-resident
            pl.BlockSpec((H, 1), lambda i: (0, 0)),    # b1: VMEM-resident
            pl.BlockSpec((A, H), lambda i: (0, 0)),    # W2: VMEM-resident
            pl.BlockSpec((A, 1), lambda i: (0, 0)),    # b2: VMEM-resident
        ],
        out_specs=pl.BlockSpec((A, TB), lambda i: (0, i)),  # lane-dense (A, B) output
        compiler_params=pltpu.CompilerParams(
            dimension_semantics=("parallel",),          # megacore sharding on v7x
            vmem_limit_bytes=vmem_limit,
        ),
        cost_estimate=pl.CostEstimate(
            flops=flops, transcendentals=0, bytes_accessed=int(bytes_accessed)),
    )(x, w1, b1, w2, b2)

    # The module returns [B, A]; consumers happy with [A, B] can skip this transpose.
    return out_t.T


def init_params(key, s_size, a_size, h_size, dtype=jnp.float32):
    """PyTorch-style uniform init, in nn.Linear's [out_features, in_features] layout."""
    k1, k2, k3, k4 = jax.random.split(key, 4)
    bound1 = 1.0 / (s_size ** 0.5)
    bound2 = 1.0 / (h_size ** 0.5)
    w1 = jax.random.uniform(k1, (h_size, s_size), dtype, -bound1, bound1)
    b1 = jax.random.uniform(k2, (h_size,), dtype, -bound1, bound1)
    w2 = jax.random.uniform(k3, (a_size, h_size), dtype, -bound2, bound2)
    b2 = jax.random.uniform(k4, (a_size,), dtype, -bound2, bound2)
    return w1, b1, w2, b2


def reference_forward(x, w1, b1, w2, b2):
    hp = jax.lax.Precision.HIGHEST
    h = jnp.maximum(jnp.dot(x, w1.T, precision=hp) + b1[None, :], 0.0)
    return jnp.dot(h, w2.T, precision=hp) + b2[None, :]


if __name__ == "__main__":
    # Shapes consistent with the module: state size 16, hidden 32, action 8.
    s_size, a_size, h_size = 16, 8, 32
    key = jax.random.PRNGKey(0)
    kx, kp = jax.random.split(key)
    w1, b1, w2, b2 = init_params(kp, s_size, a_size, h_size)

    # Main small case: batch=100 -> single full-extent block, grid of 1.
    x = jax.random.normal(kx, (100, s_size), jnp.float32)
    out = jax.block_until_ready(mlp_forward(x, w1, b1, w2, b2))
    ref = reference_forward(x, w1, b1, w2, b2)
    assert out.shape == (100, a_size)
    assert jnp.allclose(out, ref, atol=2e-2, rtol=2e-2), "mismatch vs reference (B=100)"

    # Multi-step grid (two clean 256-wide lane tiles): pipelining / megacore path.
    x2 = jax.random.normal(jax.random.PRNGKey(1), (512, s_size), jnp.float32)
    out2 = jax.block_until_ready(mlp_forward(x2, w1, b1, w2, b2))
    assert jnp.allclose(out2, reference_forward(x2, w1, b1, w2, b2),
                        atol=2e-2, rtol=2e-2), "mismatch vs reference (B=512)"

    # Ragged batch (300 = 256 + partial tile): exercises the in-kernel edge masking
    # that replaced the wrapper-side jnp.pad / output slice passes.
    x3 = jax.random.normal(jax.random.PRNGKey(2), (300, s_size), jnp.float32)
    out3 = jax.block_until_ready(mlp_forward(x3, w1, b1, w2, b2))
    assert jnp.allclose(out3, reference_forward(x3, w1, b1, w2, b2),
                        atol=2e-2, rtol=2e-2), "mismatch vs reference (B=300)"

    print("KERNEL_OK")
</pallas_src>

<mosaic_0001>
module attributes {stable_mosaic.version = 11 : i64} {
  func.func @_mlp_kernel(%arg0: i32, %arg1: memref<100x16xf32, #tpu.memory_space<vmem>>, %arg2: memref<32x16xf32, #tpu.memory_space<vmem>>, %arg3: memref<32x1xf32, #tpu.memory_space<vmem>>, %arg4: memref<8x32xf32, #tpu.memory_space<vmem>>, %arg5: memref<8x1xf32, #tpu.memory_space<vmem>>, %arg6: memref<8x100xf32, #tpu.memory_space<vmem>>) attributes {dimension_semantics = [#tpu.dimension_semantics<parallel>], iteration_bounds = array<i64: 1>, scalar_prefetch = 0 : i64, scratch_operands = 0 : i64, tpu.core_type = #tpu.core_type<tc>, window_params = [{transform_indices = @transform_0, window_bounds = array<i64: 100, 16>}, {pipeline_mode = #tpu.pipeline_mode<synchronous>, transform_indices = @transform_1, window_bounds = array<i64: 32, 16>}, {pipeline_mode = #tpu.pipeline_mode<synchronous>, transform_indices = @transform_2, window_bounds = array<i64: 32, 1>}, {pipeline_mode = #tpu.pipeline_mode<synchronous>, transform_indices = @transform_3, window_bounds = array<i64: 8, 32>}, {pipeline_mode = #tpu.pipeline_mode<synchronous>, transform_indices = @transform_4, window_bounds = array<i64: 8, 1>}, {transform_indices = @transform_5, window_bounds = array<i64: 8, 100>}]} {
    %c0 = arith.constant 0 : index
    %c0_0 = arith.constant 0 : index
    %0 = vector.load %arg2[%c0, %c0_0] : memref<32x16xf32, #tpu.memory_space<vmem>>, vector<32x16xf32>
    %c0_1 = arith.constant 0 : index
    %c0_2 = arith.constant 0 : index
    %1 = vector.load %arg1[%c0_1, %c0_2] : memref<100x16xf32, #tpu.memory_space<vmem>>, vector<100x16xf32>
    %cst = arith.constant dense<0.000000e+00> : vector<32x100xf32>
    %2 = tpu.matmul %0, %1, %cst {dimension_numbers = #tpu.dot_dimension_numbers<[1], [1], [0], [0], [0, 0, 1, 0], [], []>} : vector<32x16xf32>, vector<100x16xf32>, vector<32x100xf32> -> vector<32x100xf32>
    %c0_3 = arith.constant 0 : index
    %c0_4 = arith.constant 0 : index
    %3 = vector.load %arg3[%c0_3, %c0_4] : memref<32x1xf32, #tpu.memory_space<vmem>>, vector<32x1xf32>
    %4 = vector.broadcast %3 : vector<32x1xf32> to vector<32x100xf32>
    %5 = arith.addf %2, %4 : vector<32x100xf32>
    %cst_5 = arith.constant 0.000000e+00 : f32
    %6 = vector.broadcast %cst_5 : f32 to vector<32x100xf32>
    %7 = arith.maximumf %5, %6 : vector<32x100xf32>
    %c0_6 = arith.constant 0 : index
    %c0_7 = arith.constant 0 : index
    %8 = vector.load %arg4[%c0_6, %c0_7] : memref<8x32xf32, #tpu.memory_space<vmem>>, vector<8x32xf32>
    %cst_8 = arith.constant dense<0.000000e+00> : vector<8x100xf32>
    %9 = tpu.matmul %8, %7, %cst_8 {dimension_numbers = #tpu.dot_dimension_numbers<[1], [0], [0], [1], [0, 0, 1, 1], [], []>} : vector<8x32xf32>, vector<32x100xf32>, vector<8x100xf32> -> vector<8x100xf32>
    %c0_9 = arith.constant 0 : index
    %c0_10 = arith.constant 0 : index
    %10 = vector.load %arg5[%c0_9, %c0_10] : memref<8x1xf32, #tpu.memory_space<vmem>>, vector<8x1xf32>
    %11 = vector.broadcast %10 : vector<8x1xf32> to vector<8x100xf32>
    %12 = arith.addf %9, %11 : vector<8x100xf32>
    %c0_11 = arith.constant 0 : index
    %c0_12 = arith.constant 0 : index
    %13 = vector.load %arg6[%c0_11, %c0_12] : memref<8x100xf32, #tpu.memory_space<vmem>>, vector<8x100xf32>
    tpu.vector_store %arg6[%c0_11, %c0_12], %12 {strides = array<i32>} : memref<8x100xf32, #tpu.memory_space<vmem>>, vector<8x100xf32>,
    return
  }
  func.func @transform_0(%arg0: i32) -> (i32, i32) {
    %c0_i32 = arith.constant 0 : i32
    %c0_i32_0 = arith.constant 0 : i32
    return %arg0, %c0_i32 : i32, i32
  }
  func.func @transform_1(%arg0: i32) -> (i32, i32) {
    %c0_i32 = arith.constant 0 : i32
    %c0_i32_0 = arith.constant 0 : i32
    %c0_i32_1 = arith.constant 0 : i32
    return %c0_i32, %c0_i32_0 : i32, i32
  }
  func.func @transform_2(%arg0: i32) -> (i32, i32) {
    %c0_i32 = arith.constant 0 : i32
    %c0_i32_0 = arith.constant 0 : i32
    %c0_i32_1 = arith.constant 0 : i32
    return %c0_i32, %c0_i32_0 : i32, i32
  }
  func.func @transform_3(%arg0: i32) -> (i32, i32) {
    %c0_i32 = arith.constant 0 : i32
    %c0_i32_0 = arith.constant 0 : i32
    %c0_i32_1 = arith.constant 0 : i32
    return %c0_i32, %c0_i32_0 : i32, i32
  }
  func.func @transform_4(%arg0: i32) -> (i32, i32) {
    %c0_i32 = arith.constant 0 : i32
    %c0_i32_0 = arith.constant 0 : i32
    %c0_i32_1 = arith.constant 0 : i32
    return %c0_i32, %c0_i32_0 : i32, i32
  }
  func.func @transform_5(%arg0: i32) -> (i32, i32) {
    %c0_i32 = arith.constant 0 : i32
    %c0_i32_0 = arith.constant 0 : i32
    return %c0_i32, %arg0 : i32, i32
  }
}

</mosaic_0001>

<bundles_post_ra>
// kernel: tpu_custom_call.1
= control target key start
LH: loop header
LB: loop body
LE: loop exit
PB: predicated region body
PF: predicated region fallthrough
CT: control target
= control target key end

     0   :  { %vm62_vm0 = vcmask 130048   ;;  %v456_v6 = vmov 0   ;;  %s608_s0 = inlined_call_operand.vmem [shape: f32[100,16], index: 0, kind: input, shape index: {}]   ;;  %s609_s1 = inlined_call_operand.vmem [shape: f32[32,16], index: 1, kind: input, shape index: {}]   ;;  %s610_s2 = inlined_call_operand.vmem [shape: f32[32,1], index: 2, kind: input, shape index: {}]   ;;  %s611_s3 = inlined_call_operand.vmem [shape: f32[8,32], index: 3, kind: input, shape index: {}]   ;;  %s612_s4 = inlined_call_operand.vmem [shape: f32[8,1], index: 4, kind: input, shape index: {}]   ;;  %s613_s5 = inlined_call_operand.hbm [shape: f32[8,100], index: 5, kind: output, shape index: {}]  }
   0x1   :  { %v25_v0 = vld [vmem:[%s608_s0] sm:$0xff]  ;;  %v26_v1 = vld [vmem:[%s608_s0 + $0x8] sm:$0xff]  ;;  %v27_v2 = vld [vmem:[%s608_s0 + $0x10] sm:$0xff]  ;;  %430 = vset.pattern.permute.xlu0 %v456_v6  ;;  %431 = vset.pattern.permute.xlu1 %v456_v6 }
   0x2   :  { %v383_v3 = vpack.c.bf16 %v26_v1, %v25_v0  ;;  %vm502_vm1 = vmpackc.low %vm62_vm0, %vm62_vm0  ;;  %v28_v5 = vld [vmem:[%s608_s0 + $0x18] sm:$0xff]  ;;  %v21_v8 = vld [vmem:[%s609_s1] sm:$0xff] }
   0x3   :  { %v389_v7 = vpack.c.bf16 %v28_v5, %v27_v2  ;;  %v29_v9 = vld [vmem:[%s608_s0 + $0x20] sm:$0xff]  ;;  %366 = vmatprep.mubr.msk.f32.mxu0 %vm62_vm0, %v21_v8  ;;  %v30_v10 = vld [vmem:[%s608_s0 + $0x28] sm:$0xff]  ;;  %v40_v12 = vld [vmem:[%s610_s2 + $0x10] sm:$0xff] }
   0x4   :  { %385 = vmatprep.subr.msk.bf16.mxu0 %vm502_vm1, %v383_v3  ;;  %v38_v11 = vld [vmem:[%s610_s2] sm:$0xff]  ;;  %54 = vperm.xlu1 %431, %v40_v12  }
   0x5   :  { %388 = vmatpush3.bf16.xpose.msk.msra.mxu0 %vm502_vm1, %v383_v3  ;;  %44 = vperm.xlu0 %430, %v38_v11  }
   0x6   :  { %391 = vmatprep.subr.msk.bf16.mxu0 %vm502_vm1, %v389_v7 }
   0x7   :  { %10 = vsyncpa [#allocation3], 0  ;;  %v39_v13 = vld [vmem:[%s610_s2 + $0x8] sm:$0xff]  ;;  %v41_v14 = vld [vmem:[%s610_s2 + $0x18] sm:$0xff]  ;;  %v395_v15 = vpack.c.bf16 %v30_v10, %v29_v9  ;;  %v457_v30 = vmov 0.0|0.0   ;;  %vm458_vm2 = vmmov 0  }
   0x8   :  { %59 = vperm.xlu1 %431, %v41_v14   ;;  %v204_v16 = vld [vmem:[%s612_s4] sm:$0xff]  ;;  %v31_v17 = vld [vmem:[%s608_s0 + $0x30] sm:$0xff]  ;;  %v32_v18 = vld [vmem:[%s608_s0 + $0x38] sm:$0xff]  ;;  %419 = vmatprep.subr.bf16.mxu1 %v457_v30  ;;  %v459_v31 = vmov 0.0   ;;  %vm210_vm3 = vcmask 261120   ;;  %s460_s10 = smov [#allocation2]  }
   0x9   :  { %49 = vperm.xlu0 %430, %v39_v13   ;;  %v401_v19 = vpack.c.bf16 %v32_v18, %v31_v17  ;;  %v33_v20 = vld [vmem:[%s608_s0 + $0x40] sm:$0xff]  ;;  %v34_v21 = vld [vmem:[%s608_s0 + $0x48] sm:$0xff]  ;;  %v35_v23 = vld [vmem:[%s608_s0 + $0x50] sm:$0xff]  ;;  %380 = vmatprep.mubr.msk.f32.mxu1 %vm458_vm2, %v459_v31  ;;  %s292_s11 = sshll.u32 %s460_s10, 4  ;;  %vm284_vm4 = vcmask 818176   ;;  %s293_s11 = int_to_ptr.vmem [resolvable:$true] %s292_s11 }
   0xa   :  { %v407_v22 = vpack.c.bf16 %v34_v21, %v33_v20  ;;  %v36_v24 = vld [vmem:[%s608_s0 + $0x58] sm:$0xff]  ;;  %v37_v26 = vld [vmem:[%s608_s0 + $0x60] sm:$0xf]  ;;  %v22_v27 = vld [vmem:[%s609_s1 + $0x8] sm:$0xff]  ;;  %s432_s12 = scalar_lea.vmem %s293_s11, 128  ;;  %p437_p1 = scmp.lt.s32.totalorder %s293_s11, %s293_s11 }
   0xb   :  { %v413_v25 = vpack.c.bf16 %v36_v24, %v35_v23  ;;  %v23_v28 = vld [vmem:[%s609_s1 + $0x10] sm:$0xff]  ;;  %v24_v29 = vld [vmem:[%s609_s1 + $0x18] sm:$0xff]  ;;  %v203_v50 = vld [vmem:[%s611_s3] sm:$0xff]  ;;  %p433_p0 = scmp.ne.s32.totalorder %s293_s11, %s432_s12  ;;  %p438_p2 = scmp.lt.s32.totalorder %s432_s12, %s432_s12 }
   0xd   :  { %394 = vmatpush3.bf16.xpose.msk.msra.mxu0 %vm502_vm1, %v389_v7  ;;  %207 = vperm.xlu0 %430, %v204_v16   ;;  %p439_p3 = por %p438_p2, %p437_p1 }
   0xe   :  { %397 = vmatprep.subr.msk.bf16.mxu0 %vm502_vm1, %v395_v15 }
   0xf   :  { %p440_p4 = pnand %p439_p3, %p433_p0 }
  0x15   :  { %400 = vmatpush3.bf16.xpose.msk.msra.mxu0 %vm502_vm1, %v395_v15 }
  0x16   :  { %403 = vmatprep.subr.msk.bf16.mxu0 %vm502_vm1, %v401_v19 }
  0x1d   :  { %406 = vmatpush3.bf16.xpose.msk.msra.mxu0 %vm502_vm1, %v401_v19 }
  0x1e   :  { %409 = vmatprep.subr.msk.bf16.mxu0 %vm502_vm1, %v407_v22 }
  0x25   :  { %412 = vmatpush3.bf16.xpose.msk.msra.mxu0 %vm502_vm1, %v407_v22 }
  0x26   :  { %415 = vmatprep.subr.msk.bf16.mxu0 %vm502_vm1, %v413_v25 }
  0x2d   :  { %418 = vmatpush3.bf16.xpose.msk.msra.mxu0 %vm502_vm1, %v413_v25 }
  0x2e   :  { %364 = vmatprep.subr.msk.mxu0 %vm62_vm0, %v37_v26 }
  0x35   :  { %365 = vmatpush3.xpose.msk.msra.mxu0 %vm62_vm0, %v37_v26 }
  0x38   :  { %367 = vmatmul.mubr.msk.f32.vlgmr.msra.gmra.mrb[0].mxu0 %vm62_vm0, %v22_v27 }
  0x39   :  { %369 = vmatprep.mubr.msk.f32.mxu0 %vm62_vm0, %v23_v28 }
  0x3c   :  { %370 = vmatmul.mubr.msk.f32.gmra.mrb[2].mxu0 %vm62_vm0, %v24_v29 }
  0x83   :  { %v55_v33 = vpop.permute.xlu1 %54 }
  0x84   :  { %v45_v32 = vpop.permute.xlu0 %44 }
  0x87   :  { %v60_v40 = vpop.permute.xlu1 %59 }
  0x88   :  { %v50_v34 = vpop.permute.xlu0 %49 }
  0x8c   :  { %v208_v51 = vpop.permute.xlu0 %207 }
 0x10b   :  { %v368_v35 = vpop.f32.mrb[0].mxu0 }
 0x10c   :  { %v186_v36 = vadd.f32 %v368_v35, %v50_v34  ;;  %v180_v37 = vpop.f32.mrb[1].mxu0 }
 0x10d   :  { %v181_v38 = vadd.f32 %v180_v37, %v45_v32 }
 0x10e   :  { %v200_v39 = vmax.f32 %v186_v36, 0.0 }
 0x10f   :  { %v199_v41 = vmax.f32 %v181_v38, 0.0  ;;  %v371_v42 = vpop.f32.mrb[2].mxu0 }
 0x110   :  { %v196_v43 = vadd.f32 %v371_v42, %v60_v40  ;;  %v190_v44 = vpop.f32.mrb[3].mxu0 }
 0x111   :  { %v191_v45 = vadd.f32 %v190_v44, %v55_v33  ;;  %v420_v46 = vpack.c.bf16 %v200_v39, %v199_v41 }
 0x112   :  { %v202_v47 = vmax.f32 %v196_v43, 0.0 }
 0x113   :  { %v201_v48 = vmax.f32 %v191_v45, 0.0  ;;  %421 = vmatpush3.bf16.msra.mxu1 %v420_v46 }
 0x114   :  { %422 = vmatprep.subr.bf16.mxu1 %v457_v30 }
 0x115   :  { %v423_v49 = vpack.c.bf16 %v202_v47, %v201_v48 }
 0x117   :  { %424 = vmatpush3.bf16.msra.mxu1 %v423_v49 }
 0x11a   :  { %381 = vmatmul.mubr.msk.f32.vlgmr.msra.gmra.mrb[0].mxu1 %vm210_vm3, %v203_v50 }
 0x1ed   :  { %v280_v52 = vpop.f32.mrb[0].mxu1 }
 0x1ee   :  { %v281_v53 = vadd.f32 %v280_v52, %v208_v51  ;;  %v382_v54 = vpop.f32.mrb[1].mxu1 }
 0x1f0   :  { %285 = vst.msk [vmem:[#allocation2] sm:$0xff] %vm284_vm4, %v281_v53 }
 0x1f1   :  { %443 = shalt.err (!%p440_p4)
}
 0x1f2   :  { %s444_s14 = scalar_lea.hbm %s613_s5, 128 }
 0x1f3   :  { %p445_p5 = scmp.ne.s32.totalorder %s613_s5, %s444_s14  ;;  %p448_p6 = scmp.lt.u32.totalorder %s444_s14, %s613_s5 }
 0x1f5   :  { %p450_p7 = pnand %p448_p6, %p445_p5 }
 0x1f7   :  { %453 = shalt.err (!%p450_p7)
}
 0x1f8   :  { %295 = dma.vmem_to_hbm [thread:$0]  %s293_s11, 128, %s613_s5, [#allocation3]  }
 0x1f9   :  { %454 = dma.done.wait [#allocation3], 128  }
 0x1fa   :  { %455 = vsyncadd [#allocation3], 4294967168 }
 0x1fb   :  { %299 = vsyncpa [#allocation3], 1 }

</bundles_post_ra>
